<compile_context>
chip_gen: v7x
topology: tpu7x:2x2x1
jax: 0.10.0
libtpu: 0.0.40
codegen_flags: <defaults>
</compile_context>

<pallas_src>
import jax
import jax.numpy as jnp
from jax.experimental import pallas as pl
from jax.experimental.pallas import tpu as pltpu

LANE = 128


def _round_up(x, m):
    return (x + m - 1) // m * m


def _vmem_limit_bytes():
    # generation-specific VMEM budget: ~3/4 of physical
    # (96 MiB on v5e/v6e, 48 MiB on v7x); safe fallback if the query is unavailable.
    try:
        cap = getattr(pltpu.get_tpu_info(), "vmem_capacity_bytes", None)
        if cap:
            return int(cap) * 3 // 4
    except Exception:
        pass
    return 48 * 1024 * 1024


# ---------------------------------------------------------------------------
# Pallas kernels
# ---------------------------------------------------------------------------

def _lin_kernel(x_ref, w_ref, b_ref, o_ref):
    # fused per-type projection: block-diagonal stacked features @ stacked weights + per-node bias
    o_ref[...] = (jnp.dot(x_ref[...], w_ref[...],
                          preferred_element_type=jnp.float32)
                  + b_ref[...]).astype(o_ref.dtype)


def _msg_kernel(x_ref, w_ref, o_ref):
    # H[r, row_tile, :] = x_tile @ W_r   (bf16 operands, f32 accumulation, stored bf16)
    o_ref[...] = jnp.dot(x_ref[...], w_ref[...],
                         preferred_element_type=jnp.float32).astype(o_ref.dtype)


def _agg_kernel(a_ref, h_ref, inv_ref, x_ref, root_ref, b_ref, o_ref, acc_ref):
    # grid = (row_tiles, R); relation axis is the reduction ('arbitrary') axis.
    r = pl.program_id(1)

    @pl.when(r == 0)
    def _init():
        # self/root term + bias (bf16 operands, f32 accumulation; bias stays f32)
        acc_ref[...] = (jnp.dot(x_ref[...], root_ref[...],
                                preferred_element_type=jnp.float32)
                        + b_ref[...])

    # binary/count adjacency on the MXU; mean normalization applied as an f32 row scale
    # on the VPU (free slot while the MXU is busy), so 1/deg never gets bf16-rounded.
    part = jnp.dot(a_ref[...], h_ref[...], preferred_element_type=jnp.float32)
    acc_ref[...] += inv_ref[...] * part

    @pl.when(r == pl.num_programs(1) - 1)
    def _done():
        o_ref[...] = acc_ref[...]


# ---------------------------------------------------------------------------
# Pallas wrappers
# ---------------------------------------------------------------------------

def pallas_project(x_stacked, w_stacked, bias_rows, tile_rows, vmem_limit):
    """Fused per-type Linear: (N_pad, K_pad) @ (K_pad, 128) + per-node bias -> (N_pad, 128) bf16."""
    N_pad, K_pad = x_stacked.shape
    F = w_stacked.shape[1]
    n_tiles = N_pad // tile_rows
    return pl.pallas_call(
        _lin_kernel,
        out_shape=jax.ShapeDtypeStruct((N_pad, F), jnp.bfloat16),
        grid_spec=pltpu.PrefetchScalarGridSpec(
            num_scalar_prefetch=0,
            grid=(n_tiles,),
            in_specs=[
                pl.BlockSpec((tile_rows, K_pad), lambda i: (i, 0)),
                pl.BlockSpec((K_pad, F), lambda i: (0, 0)),
                pl.BlockSpec((tile_rows, F), lambda i: (i, 0)),
            ],
            out_specs=pl.BlockSpec((tile_rows, F), lambda i: (i, 0)),
        ),
        compiler_params=pltpu.CompilerParams(
            dimension_semantics=("parallel",),
            vmem_limit_bytes=vmem_limit),
    )(x_stacked, w_stacked, bias_rows)


def pallas_rgcn_conv(x_pad, adj_bf, inv_deg, weight_pad, root_pad, bias_pad,
                     tile_rows, vmem_limit):
    """One RGCNConv layer.

    x_pad:      (N_pad, Fin_pad)        f32 or bf16 node features (cast to bf16 here)
    adj_bf:     (R, N_pad, N_pad)       bf16 integer edge-count adjacency (exact in bf16)
    inv_deg:    (R, N_pad, 1)           f32  1/deg_r(i) mean-normalization scale
    weight_pad: (R, Fin_pad, Fout_pad)  bf16 per-relation weights (basis-composed, padded)
    root_pad:   (Fin_pad, Fout_pad)     bf16
    bias_pad:   (1, Fout_pad)           f32
    """
    N_pad, Fin_pad = x_pad.shape
    R = weight_pad.shape[0]
    Fout_pad = root_pad.shape[1]
    n_tiles = N_pad // tile_rows
    x_bf = x_pad.astype(jnp.bfloat16)

    # --- kernel 1: per-relation messages H[r] = x @ W_r ---------------------------------
    # grid = (R, n_tiles): W_r's block index depends only on the outer axis, so it stays
    # resident across the inner row-tile loop (no per-step weight re-DMA).
    h = pl.pallas_call(
        _msg_kernel,
        out_shape=jax.ShapeDtypeStruct((R, N_pad, Fout_pad), jnp.bfloat16),
        grid_spec=pltpu.PrefetchScalarGridSpec(
            num_scalar_prefetch=0,
            grid=(R, n_tiles),
            in_specs=[
                pl.BlockSpec((tile_rows, Fin_pad), lambda r, i: (i, 0)),
                pl.BlockSpec((None, Fin_pad, Fout_pad), lambda r, i: (r, 0, 0)),
            ],
            out_specs=pl.BlockSpec((None, tile_rows, Fout_pad), lambda r, i: (r, i, 0)),
        ),
        compiler_params=pltpu.CompilerParams(
            dimension_semantics=("parallel", "parallel"),
            vmem_limit_bytes=vmem_limit),
    )(x_bf, weight_pad)

    # --- kernel 2: out[i] = x@root + bias + sum_r inv_deg[r,i] * (A_r[i,:] @ H_r) --------
    # Relation axis is a K-style reduction grid axis with an f32 VMEM accumulator:
    # per-step VMEM is one A_r row slab + one H_r table (bounded, pipelined against the MXU).
    out = pl.pallas_call(
        _agg_kernel,
        out_shape=jax.ShapeDtypeStruct((N_pad, Fout_pad), jnp.float32),
        grid_spec=pltpu.PrefetchScalarGridSpec(
            num_scalar_prefetch=0,
            grid=(n_tiles, R),
            in_specs=[
                pl.BlockSpec((None, tile_rows, N_pad), lambda i, r: (r, i, 0)),   # A_r row slab
                pl.BlockSpec((None, N_pad, Fout_pad), lambda i, r: (r, 0, 0)),    # H_r messages
                pl.BlockSpec((None, tile_rows, 1), lambda i, r: (r, i, 0)),       # 1/deg_r (f32)
                pl.BlockSpec((tile_rows, Fin_pad), lambda i, r: (i, 0)),          # x (bf16)
                pl.BlockSpec((Fin_pad, Fout_pad), lambda i, r: (0, 0)),           # root (bf16)
                pl.BlockSpec((1, Fout_pad), lambda i, r: (0, 0)),                 # bias (f32)
            ],
            out_specs=pl.BlockSpec((tile_rows, Fout_pad), lambda i, r: (i, 0)),
            scratch_shapes=[pltpu.VMEM((tile_rows, Fout_pad), jnp.float32)],
        ),
        compiler_params=pltpu.CompilerParams(
            dimension_semantics=("parallel", "arbitrary"),
            vmem_limit_bytes=vmem_limit),
    )(adj_bf, h, inv_deg, x_bf, root_pad, bias_pad)
    return out


# ---------------------------------------------------------------------------
# Model wrapper (glue in plain JAX)
# ---------------------------------------------------------------------------

def compose_weight(comp, basis):
    # W_r = sum_b comp[r, b] * basis[b]   -> (R, Fin, Fout)
    return jnp.einsum("rb,bio->rio", comp, basis)


def _pad_conv_params(conv_params, fin_pad, fout_pad):
    w = compose_weight(conv_params["comp"], conv_params["basis"])  # (R, Fin, Fout)
    R, Fin, Fout = w.shape
    w_p = (jnp.zeros((R, fin_pad, fout_pad), jnp.float32)
           .at[:, :Fin, :Fout].set(w).astype(jnp.bfloat16))
    root_p = (jnp.zeros((fin_pad, fout_pad), jnp.float32)
              .at[:Fin, :Fout].set(conv_params["root"]).astype(jnp.bfloat16))
    bias_p = jnp.zeros((1, fout_pad), jnp.float32).at[0, :Fout].set(conv_params["bias"])
    return w_p, root_p, bias_p


def rgcn_forward(params, node_feats, adj_counts, num_user_nodes, out_channels):
    vmem_limit = _vmem_limit_bytes()

    node_counts = [x.shape[0] for x in node_feats]
    init_sizes = [x.shape[1] for x in node_feats]
    N = sum(node_counts)
    R = adj_counts.shape[0]

    # Row tiling: >=128-row tiles (fills the MXU, few grid steps) and >=2 steps on the
    # 'parallel' row axis so both v7x TensorCores get work. N_pad is a multiple of 128.
    N_pad = max(_round_up(N, 128), 256)
    tile_rows = min(256, N_pad // 2)
    N_pad = _round_up(N_pad, tile_rows)
    n_tiles = N_pad // tile_rows
    assert tile_rows >= 128 and n_tiles >= 2

    # --- 1) trans_dimensions: the four per-type Linears fused into ONE Pallas kernel -----
    # block-diagonal stacked inputs (N_pad, K_pad) @ stacked weights (K_pad, 128) + per-node bias.
    K_in = sum(init_sizes)
    K_pad = _round_up(K_in, 128)
    x_stacked = jnp.zeros((N_pad, K_pad), jnp.float32)
    w_stacked = jnp.zeros((K_pad, LANE), jnp.float32)
    bias_rows = jnp.zeros((N_pad, LANE), jnp.float32)
    row_off, col_off = 0, 0
    for x_t, (w, b) in zip(node_feats, params["lins"]):
        n_t, f_t = x_t.shape
        out_ch = w.shape[0]
        x_stacked = x_stacked.at[row_off:row_off + n_t, col_off:col_off + f_t].set(x_t)
        w_stacked = w_stacked.at[col_off:col_off + f_t, :out_ch].set(w.T)
        bias_rows = bias_rows.at[row_off:row_off + n_t, :out_ch].set(b)
        row_off += n_t
        col_off += f_t
    x = pallas_project(x_stacked.astype(jnp.bfloat16), w_stacked.astype(jnp.bfloat16),
                       bias_rows, tile_rows, vmem_limit)            # (N_pad, 128) bf16

    # --- 2) adjacency: exact integer edge counts in bf16 + separate f32 1/deg scale ------
    deg = adj_counts.sum(axis=2, keepdims=True)                     # (R, N, 1)
    inv = 1.0 / jnp.maximum(deg, 1.0)
    adj_p = jnp.zeros((R, N_pad, N_pad), jnp.float32).at[:, :N, :N].set(adj_counts)
    adj_bf = adj_p.astype(jnp.bfloat16)                             # exact (small integers)
    inv_p = jnp.zeros((R, N_pad, 1), jnp.float32).at[:, :N, :].set(inv)

    # --- 3) conv1 -> conv2 (no nonlinearity between them in the reference forward) -------
    w1, r1, b1 = _pad_conv_params(params["conv1"], LANE, LANE)
    x = pallas_rgcn_conv(x, adj_bf, inv_p, w1, r1, b1, tile_rows, vmem_limit)
    w2, r2, b2 = _pad_conv_params(params["conv2"], LANE, LANE)
    x = pallas_rgcn_conv(x, adj_bf, inv_p, w2, r2, b2, tile_rows, vmem_limit)

    # --- 4) keep only the 'user' nodes (first node type) and the real output channels ----
    return x[:num_user_nodes, :out_channels]


# pure-JAX f32 reference for a single RGCNConv (sanity check only)
def _ref_rgcn_conv(x, adj_norm, weight, root, bias):
    msg = jnp.einsum("nk,rkf->rnf", x, weight)
    agg = jnp.einsum("rij,rjf->if", adj_norm, msg)
    return x @ root + bias + agg


# ---------------------------------------------------------------------------
# Main
# ---------------------------------------------------------------------------

if __name__ == "__main__":
    key = jax.random.PRNGKey(0)

    # synthetic heterogeneous graph (DBLP-like): 4 node types, 6 relations
    node_types = ["user", "paper", "term", "conference"]
    node_counts = [8, 16, 12, 4]          # num_nodes = graph['user'].x.shape[0] = 8
    init_sizes = [12, 20, 16, 8]          # per-type raw feature dims
    num_relations = 6
    num_bases = 30
    in_channels, hidden_channels, out_channels = 32, 32, 16

    N = sum(node_counts)
    num_user_nodes = node_counts[0]
    num_edges = 96

    keys = iter(jax.random.split(key, 64))

    node_feats = [
        jax.random.normal(next(keys), (c, f), dtype=jnp.float32)
        for c, f in zip(node_counts, init_sizes)
    ]

    # random homogeneous edge_index / edge_type
    src = jax.random.randint(next(keys), (num_edges,), 0, N)
    dst = jax.random.randint(next(keys), (num_edges,), 0, N)
    edge_type = jax.random.randint(next(keys), (num_edges,), 0, num_relations)

    # dense per-relation edge-count adjacency (kept un-normalized; 1/deg applied in-kernel)
    adj = jnp.zeros((num_relations, N, N), dtype=jnp.float32)
    adj = adj.at[edge_type, dst, src].add(1.0)

    def init_mat(k, shape, scale):
        return scale * jax.random.normal(k, shape, dtype=jnp.float32)

    params = {
        "lins": [
            (init_mat(next(keys), (in_channels, f), 0.1),   # torch layout (out, in)
             init_mat(next(keys), (in_channels,), 0.1))
            for f in init_sizes
        ],
        "conv1": {
            "basis": init_mat(next(keys), (num_bases, in_channels, hidden_channels), 0.05),
            "comp": init_mat(next(keys), (num_relations, num_bases), 0.2),
            "root": init_mat(next(keys), (in_channels, hidden_channels), 0.1),
            "bias": init_mat(next(keys), (hidden_channels,), 0.1),
        },
        "conv2": {
            "basis": init_mat(next(keys), (num_bases, hidden_channels, out_channels), 0.05),
            "comp": init_mat(next(keys), (num_relations, num_bases), 0.2),
            "root": init_mat(next(keys), (hidden_channels, out_channels), 0.1),
            "bias": init_mat(next(keys), (out_channels,), 0.1),
        },
    }

    out = jax.block_until_ready(
        rgcn_forward(params, node_feats, adj, num_user_nodes, out_channels))
    assert out.shape == (num_user_nodes, out_channels), out.shape

    # pure-JAX f32 reference of the same math (kernel uses bf16 matmul operands with f32
    # accumulation and exact adjacency -> modest tolerance)
    deg = adj.sum(axis=2, keepdims=True)
    adj_norm = adj / jnp.maximum(deg, 1.0)
    xs_ref = [x @ w.T + b for x, (w, b) in zip(node_feats, params["lins"])]
    x_ref = jnp.concatenate(xs_ref, axis=0)
    x_ref = _ref_rgcn_conv(x_ref, adj_norm,
                           compose_weight(params["conv1"]["comp"], params["conv1"]["basis"]),
                           params["conv1"]["root"], params["conv1"]["bias"])
    x_ref = _ref_rgcn_conv(x_ref, adj_norm,
                           compose_weight(params["conv2"]["comp"], params["conv2"]["basis"]),
                           params["conv2"]["root"], params["conv2"]["bias"])
    x_ref = x_ref[:num_user_nodes]
    max_err = float(jnp.abs(out - x_ref).max())
    assert jnp.allclose(out, x_ref, atol=3e-2, rtol=3e-2), max_err

    print("KERNEL_OK")
</pallas_src>

<mosaic_0001>
module attributes {stable_mosaic.version = 11 : i64} {
  func.func @_lin_kernel(%arg0: i32, %arg1: memref<128x128xbf16, #tpu.memory_space<vmem>>, %arg2: memref<128x128xbf16, #tpu.memory_space<vmem>>, %arg3: memref<128x128xf32, #tpu.memory_space<vmem>>, %arg4: memref<128x128xbf16, #tpu.memory_space<vmem>>) attributes {dimension_semantics = [#tpu.dimension_semantics<parallel>], iteration_bounds = array<i64: 2>, scalar_prefetch = 0 : i64, scratch_operands = 0 : i64, tpu.core_type = #tpu.core_type<tc>, window_params = [{transform_indices = @transform_0, window_bounds = array<i64: 128, 128>}, {pipeline_mode = #tpu.pipeline_mode<synchronous>, transform_indices = @transform_1, window_bounds = array<i64: 128, 128>}, {transform_indices = @transform_2, window_bounds = array<i64: 128, 128>}, {transform_indices = @transform_3, window_bounds = array<i64: 128, 128>}]} {
    %c0 = arith.constant 0 : index
    %c0_0 = arith.constant 0 : index
    %0 = vector.load %arg1[%c0, %c0_0] : memref<128x128xbf16, #tpu.memory_space<vmem>>, vector<128x128xbf16>
    %c0_1 = arith.constant 0 : index
    %c0_2 = arith.constant 0 : index
    %1 = vector.load %arg2[%c0_1, %c0_2] : memref<128x128xbf16, #tpu.memory_space<vmem>>, vector<128x128xbf16>
    %cst = arith.constant dense<0.000000e+00> : vector<128x128xf32>
    %2 = tpu.matmul %0, %1, %cst {dimension_numbers = #tpu.dot_dimension_numbers<[1], [0], [0], [1], [0, 0, 1, 1], [], []>} : vector<128x128xbf16>, vector<128x128xbf16>, vector<128x128xf32> -> vector<128x128xf32>
    %c0_3 = arith.constant 0 : index
    %c0_4 = arith.constant 0 : index
    %3 = vector.load %arg3[%c0_3, %c0_4] : memref<128x128xf32, #tpu.memory_space<vmem>>, vector<128x128xf32>
    %4 = arith.addf %2, %3 : vector<128x128xf32>
    %5 = arith.truncf %4 : vector<128x128xf32> to vector<128x128xbf16>
    %c0_5 = arith.constant 0 : index
    %c0_6 = arith.constant 0 : index
    %6 = vector.load %arg4[%c0_5, %c0_6] : memref<128x128xbf16, #tpu.memory_space<vmem>>, vector<128x128xbf16>
    tpu.vector_store %arg4[%c0_5, %c0_6], %5 {strides = array<i32>} : memref<128x128xbf16, #tpu.memory_space<vmem>>, vector<128x128xbf16>,
    return
  }
  func.func @transform_0(%arg0: i32) -> (i32, i32) {
    %c0_i32 = arith.constant 0 : i32
    %c0_i32_0 = arith.constant 0 : i32
    return %arg0, %c0_i32 : i32, i32
  }
  func.func @transform_1(%arg0: i32) -> (i32, i32) {
    %c0_i32 = arith.constant 0 : i32
    %c0_i32_0 = arith.constant 0 : i32
    %c0_i32_1 = arith.constant 0 : i32
    return %c0_i32, %c0_i32_0 : i32, i32
  }
  func.func @transform_2(%arg0: i32) -> (i32, i32) {
    %c0_i32 = arith.constant 0 : i32
    %c0_i32_0 = arith.constant 0 : i32
    return %arg0, %c0_i32 : i32, i32
  }
  func.func @transform_3(%arg0: i32) -> (i32, i32) {
    %c0_i32 = arith.constant 0 : i32
    %c0_i32_0 = arith.constant 0 : i32
    return %arg0, %c0_i32 : i32, i32
  }
}

</mosaic_0001>

<bundles_post_ra>
// kernel: tpu_custom_call.1
= control target key start
LH: loop header
LB: loop body
LE: loop exit
PB: predicated region body
PF: predicated region fallthrough
CT: control target
= control target key end

     0   :  { %8 = vsyncpa [#allocation3], 0  ;;  %s1438_s0 = inlined_call_operand.hbm [shape: bf16[256,128], index: 0, kind: input, shape index: {}]   ;;  %s1439_s1 = inlined_call_operand.hbm [shape: bf16[128,128], index: 1, kind: input, shape index: {}]   ;;  %s1440_s2 = inlined_call_operand.hbm [shape: f32[256,128], index: 2, kind: input, shape index: {}]   ;;  %s1441_s3 = inlined_call_operand.hbm [shape: bf16[256,128], index: 3, kind: output, shape index: {}]  }
   0x1   :  { %10 = vsyncpa [#allocation3 + $0x1], 0 }
   0x2   :  { %11 = vsyncpa [#allocation6], 0 }
   0x3   :  { %12 = vsyncpa [#allocation4], 0 }
   0x4   :  { %14 = vsyncpa [#allocation4 + $0x1], 0  ;;  %s1143_s12 = smov 0   ;;  %s1145_s13 = smov 0  }
   0x5   :  { %s1147_s14 = smov 0   ;;  %s1149_s15 = smov 0  }
   0x6 LB: > { %s1164_s16 = sadd.s32 1, %s1111_s15   ;;  %s27_s17 = sadd.s32 1, %s1107_s14  ;;  %s1111_s15 = sphi %s1149_s15, %s1466_s15   ;;  %s1107_s14 = sphi %s1147_s14, %s1465_s14   ;;  %s1103_s13 = sphi %s1145_s13, %s1464_s13   ;;  %s1099_s12 = sphi %s1143_s12, %s1463_s12  }
   0x7   : > { %s24_s18 = ssub.s32 %s1111_s15, %s1164_s16  ;;  %p34_p0 = scmp.ne.s32.totalorder %s1107_s14, %s1103_s13 }
   0x8   : > { %p25_p1 = scmp.eq.s32.totalorder %s24_s18, 0  ;;  %p35_p2 = scmp.eq.s32.totalorder %s1111_s15, 0 }
   0x9   : > { %p891_p5 = scmp.lt.s32.totalorder %s1111_s15, 2  ;;  %s150_s20 = sand.u32 1, %s1111_s15  }
   0xa   : > { %s1173_s19 = scalar_select %p25_p1, %s1107_s14, %s27_s17  }
   0xb   : > { %p36_p3 = por %p35_p2, %p34_p0  ;;  %s152_s21 = sand.u32 1, %s1107_s14  }
   0xc   : > { %s687_s22 = sshll.u32 %s152_s21, 6  ;;  %s735_s23 = sshll.u32 %s1111_s15, 10 }
   0xd   : > { %s1186_s26 = scalar_lea.hbm %s1438_s0, %s735_s23  ;;  %s154_s27 = scalar_lea.vmem [#allocation2], %s687_s22 }
   0xe   : > { %s161_s28 = sshll.u32 %s154_s27, 4  ;;  %p1188_p6 = pnand %p891_p5, %p36_p3  ;;  %s1192_s28 = int_to_ptr.vmem [resolvable:$true] %s161_s28 }
   0xf   : > { %s1194_s30 = sshll.u32 %s152_s21, 7  ;;  %s1196_s4 = scalar_lea.sflag [#allocation3], %s150_s20 }
  0x10   : > { %s949_s5 = scalar_lea.hbm %s1186_s26, 1024  ;;  %p951_p8 = pneg %p1188_p6 }
  0x11   : > { %p950_p7 = scmp.ne.s32.totalorder %s1186_s26, %s949_s5  ;;  %s954_s8 = scalar_lea.hbm %s1438_s0, 2048 }
  0x12   : > { %p955_p11 = scmp.lt.u32.totalorder %s1186_s26, %s1438_s0  ;;  %p956_p12 = scmp.lt.u32.totalorder %s954_s8, %s949_s5 }
  0x13   : > { %p952_p9 = pnand %p951_p8, %p950_p7  ;;  %p958_p1 = scmp.lt.u32.totalorder %s949_s5, %s1186_s26 }
  0x14   : > { %p957_p13 = por %p956_p12, %p955_p11 }
  0x15   : > { %p953_p10 = pneg %p952_p9 }
  0x16   : > { %p959_p2 = por %p958_p1, %p957_p13 }
  0x18   : > { %p960_p3 = pnand %p959_p2, %p953_p10 }
  0x1a   : > { %963 = shalt.err (!%p960_p3)
}
  0x1b   : > { %s964_s11 = scalar_lea.vmem %s1192_s28, 1024  ;;  %s1113_s17 = smov [#allocation2]  }
  0x1c   : > { %p965_p5 = scmp.ne.s32.totalorder %s1192_s28, %s964_s11  ;;  %s969_s18 = sshll.u32 %s1113_s17, 4  ;;  %s970_s18 = int_to_ptr.vmem [resolvable:$false] %s969_s18 }
  0x1d   : > { %s971_s20 = scalar_lea.vmem %s970_s18, 2048  ;;  %p972_p4 = scmp.lt.s32.totalorder %s1192_s28, %s970_s18 }
  0x1e   : > { %p967_p7 = pnand %p965_p5, %p951_p8  ;;  %p973_p11 = scmp.lt.s32.totalorder %s971_s20, %s964_s11 }
  0x20   : > { %p968_p9 = pneg %p967_p7  ;;  %p974_p12 = por %p973_p11, %p972_p4 }
  0x22   : > { %p975_p13 = pnand %p974_p12, %p968_p9 }
  0x24   : > { %978 = shalt.err (!%p975_p13)
}
  0x25   : > { %s1446_s21 = smov 64   ;;  %s1447_s22 = smov 4  }
  0x26   : > { %882 = dma.hbm_to_vmem [thread:$0]  (!%p1188_p6), %s1186_s26, 1024, %s1192_s28, %s1196_s4, %s1446_s21, %s1446_s21, %s1447_s22  }
  0x27   : > { %s175_s23 = scalar_lea.vmem [#allocation7], %s1194_s30  ;;  %s1229_s25 = sadd.s32 4294967295, %s1111_s15  }
  0x28   : > { %s182_s24 = sshll.u32 %s175_s23, 4  ;;  %s683_s27 = sadd.s32 4294967294, %s1111_s15   ;;  %s1269_s24 = int_to_ptr.vmem [resolvable:$true] %s182_s24 }
  0x29   : > { %p40_p4 = scmp.ne.s32.totalorder %s1103_s13, %s1099_s12  ;;  %p1442_p10 = scmp.eq.s32.totalorder %s1229_s25, 0 }
  0x2a   : > { %p111_p1 = scmp.eq.s32.totalorder %s1229_s25, 1  ;;  %p117_p2 = scmp.eq.s32.totalorder %s683_s27, 1 }
  0x2b   : > { %p684_p3 = scmp.ge.s32.totalorder %s1111_s15, 1  ;;  %p1239_p5 = por %p1442_p10, %p40_p4 }
  0x2c   : > { %p1246_p7 = por %p111_p1, %p34_p0  ;;  %p1250_p9 = por %p117_p2, %p40_p4 }
  0x2d   : > { %s1449_s5 = scalar_select %p1239_p5, 1, 0 }
  0x2e   : > { %s1450_s26 = scalar_select %p1246_p7, 1, 0 }
  0x2f   : > { %s1451_s28 = scalar_select %p1250_p9, 1, 0 }
  0x30   : > { %p124_p11 = scmp.lt.s32.totalorder %s1111_s15, 3  ;;  %s1116_s6 = smov [#allocation5]  }
  0x31   : > { %s136_s7 = sshll.u32 %s1116_s6, 4  ;;  %s736_s8 = sshll.u32 %s1111_s15, 11  ;;  %s1259_s7 = int_to_ptr.vmem [resolvable:$true] %s136_s7 }
  0x32   : > { %p1255_p12 = pnand %p684_p3, %p124_p11  ;;  %s1267_s11 = scalar_lea.hbm %s1440_s2, %s736_s8 }
  0x33   : > { %s979_s18 = scalar_lea.hbm %s1267_s11, 2048  ;;  %s984_s27 = scalar_lea.hbm %s1440_s2, 4096 }
  0x34   : > { %s1452_s30 = scalar_select %p1255_p12, 1, 0 }
  0x35   : > { %p875_p0 = pneg %p1255_p12  ;;  %p980_p4 = scmp.ne.s32.totalorder %s1267_s11, %s979_s18 }
  0x36   : > { %p985_p3 = scmp.lt.u32.totalorder %s1267_s11, %s1440_s2  ;;  %p986_p11 = scmp.lt.u32.totalorder %s984_s27, %s979_s18 }
  0x37   : > { %p1273_p13 = pnand %p875_p0, %p1442_p10  ;;  %p982_p1 = pnand %p980_p4, %p951_p8 }
  0x38   : > { %p987_p9 = por %p986_p11, %p985_p3  ;;  %p988_p0 = scmp.lt.u32.totalorder %s979_s18, %s1267_s11 }
  0x39   : > { %p983_p2 = pneg %p982_p1 }
  0x3a   : > { %p989_p10 = por %p988_p0, %p987_p9 }
  0x3c   : > { %p990_p7 = pnand %p989_p10, %p983_p2 }
  0x3e   : > { %993 = shalt.err (!%p990_p7)
}
  0x3f   : > { %s994_s9 = scalar_lea.vmem %s1269_s24, 2048  ;;  %s1117_s10 = smov [#allocation7]  }
  0x40   : > { %p995_p4 = scmp.ne.s32.totalorder %s1269_s24, %s994_s9  ;;  %s999_s20 = sshll.u32 %s1117_s10, 4  ;;  %s1000_s20 = int_to_ptr.vmem [resolvable:$false] %s999_s20 }
  0x41   : > { %s1001_s23 = scalar_lea.vmem %s1000_s20, 4096  ;;  %p1002_p12 = scmp.lt.s32.totalorder %s1269_s24, %s1000_s20 }
  0x42   : > { %p997_p1 = pnand %p995_p4, %p951_p8  ;;  %p1003_p3 = scmp.lt.s32.totalorder %s1001_s23, %s994_s9 }
  0x44   : > { %p998_p5 = pneg %p997_p1  ;;  %p1004_p11 = por %p1003_p3, %p1002_p12 }
  0x46   : > { %p1005_p9 = pnand %p1004_p11, %p998_p5 }
  0x48   : > { %1008 = shalt.err (!%p1005_p9)
}
  0x49   : > { %s1118_s18 = smov 128   ;;  %s1119_s27 = smov 8  }
  0x4a   : > { %885 = dma.hbm_to_vmem [thread:$0]  (!%p1188_p6), %s1267_s11, 2048, %s1269_s24, %s1196_s4, %s1118_s18, %s1118_s18, %s1119_s27  }
  0x4b   : > { %s1009_s10 = scalar_lea.hbm %s1439_s1, 1024  ;;  %p1011_p10 = pneg %p1273_p13 }
  0x4c   : > { %p1010_p8 = scmp.ne.s32.totalorder %s1439_s1, %s1009_s10  ;;  %p1016_p12 = scmp.lt.u32.totalorder %s1009_s10, %s1439_s1 }
  0x4e   : > { %p1012_p5 = pnand %p1011_p10, %p1010_p8 }
  0x50   : > { %p1013_p7 = pneg %p1012_p5 }
  0x52   : > { %p1018_p2 = pnand %p1016_p12, %p1013_p7 }
  0x54   : > { %1021 = shalt.err (!%p1018_p2)
}
  0x55   : > { %s1022_s29 = scalar_lea.vmem %s1259_s7, 1024  ;;  %p1030_p1 = scmp.lt.s32.totalorder %s1259_s7, %s1259_s7 }
  0x56   : > { %p1023_p6 = scmp.ne.s32.totalorder %s1259_s7, %s1022_s29  ;;  %p1031_p3 = scmp.lt.s32.totalorder %s1022_s29, %s1022_s29 }
  0x58   : > { %p1025_p0 = pnand %p1023_p6, %p1011_p10  ;;  %p1032_p11 = por %p1031_p3, %p1030_p1 }
  0x5a   : > { %p1026_p4 = pneg %p1025_p0 }
  0x5c   : > { %p1033_p9 = pnand %p1032_p11, %p1026_p4 }
  0x5e   : > { %1036 = shalt.err (!%p1033_p9)
}
  0x5f   : > { %s1454_s4 = smov 4   ;;  %s1455_s21 = smov 64  }
  0x60   : > { %878 = dma.hbm_to_vmem [thread:$0]  (!%p1273_p13), %s1439_s1, 1024, %s1259_s7, [#allocation6], %s1455_s21, %s1455_s21, %s1454_s4  }
  0x61   : > { %p1456_p8 = scmp.ne.s32.totalorder %s1452_s30, 0 }
  0x62   : > { %s196_s11 = sand.u32 (!%p1456_p8), 1, %s1229_s25   ;;  %s1329_s23 = sand.u32 (!%p1456_p8), 1, %s1103_s13  }
  0x63   : > { %194 = sbr.rel (%p1456_p8) target bundleno = 388 (0x184), region = 32  ;;  %s694_s17 = sshll.u32 (!%p1456_p8), %s1329_s23, 6 }
  0x64   : > { %s197_s18 = scalar_lea.sflag (!%p1456_p8), [#allocation3], %s196_s11  ;;  %s1334_s27 = scalar_lea.vmem (!%p1456_p8), [#allocation2], %s694_s17 }
  0x65   : > { %p1457_p10 = scmp.ne.s32.totalorder (!%p1456_p8), %s1449_s5, 0 }
  0x6a   : > { %1082 = dma.done.wait (%p1457_p10), %s197_s18, 1024  }
  0x6b   : > { %1084 = vsyncadd (%p1457_p10), %s197_s18, 4294966272  ;;  %p1458_p13 = scmp.eq.s32.totalorder %s1229_s25, 0 }
  0x6d   : > { %1086 = dma.done.wait (%p1458_p13), [#allocation6], 1024   ;;  %p1459_p5 = pmov %p1458_p13 }
  0x6e   : > { %s696_s30 = sshll.u32 %s1329_s23, 7 }
  0x6f   : > { %1088 = vsyncadd (%p1459_p5), [#allocation6], 4294966272  ;;  %s1345_s7 = scalar_lea.vmem [#allocation7], %s696_s30 }
  0x70   : > { %1090 = dma.done.wait (%p1457_p10), %s197_s18, 2048  }
  0x71   : > { %1092 = vsyncadd (%p1457_p10), %s197_s18, 4294965248  ;;  %v933_v0 = vld [vmem:[#allocation5] sm:$0xff]   ;;  %v934_v1 = vld [vmem:[#allocation5 + $0x8] sm:$0xff]   ;;  %s1369_s5 = scalar_lea.vmem [#allocation8], %s694_s17  ;;  %s753_s8 = sshll.u32 %s1229_s25, 10 }
  0x72   : > { %817 = vmatprep.subr.bf16.mxu0 %v933_v0  ;;  %849 = vmatprep.subr.bf16.mxu1 %v933_v0  ;;  %v935_v2 = vld [vmem:[#allocation5 + $0x10] sm:$0xff]   ;;  %v936_v3 = vld [vmem:[#allocation5 + $0x18] sm:$0xff]   ;;  %v941_v4 = vld [vmem:[%s1334_s27] sm:$0xff]   ;;  %s580_s6 = sshll.u32 %s1369_s5, 4  ;;  %s1390_s9 = scalar_lea.hbm %s1441_s3, %s753_s8  ;;  %s1385_s6 = int_to_ptr.vmem [resolvable:$true] %s580_s6 }
  0x73   : > { %818 = vmatpush3.bf16.msra.mxu0 %v933_v0  ;;  %857 = vmatpush3.bf16.msra.mxu1 %v933_v0  ;;  %v942_v5 = vld [vmem:[%s1334_s27 + $0x20] sm:$0xff]   ;;  %v938_v7 = vld [vmem:[#allocation5 + $0x28] sm:$0xff]   ;;  %v939_v8 = vld [vmem:[#allocation5 + $0x30] sm:$0xff]   ;;  %s567_s20 = scalar_lea.sflag [#allocation4], %s1329_s23  ;;  %s1037_s29 = scalar_lea.vmem %s1385_s6, 1024 }
  0x74   : > { %819 = vmatprep.subr.bf16.mxu0 %v934_v1  ;;  %850 = vmatprep.subr.bf16.mxu1 %v934_v1  ;;  %v937_v6 = vld [vmem:[#allocation5 + $0x20] sm:$0xff]   ;;  %v940_v9 = vld [vmem:[#allocation5 + $0x38] sm:$0xff]   ;;  %v943_v10 = vld [vmem:[%s1334_s27 + $0x8] sm:$0xff]   ;;  %p1038_p7 = scmp.ne.s32.totalorder %s1385_s6, %s1037_s29  ;;  %p1460_p12 = scmp.ne.s32.totalorder %s1450_s26, 0 }
  0x75   : > { %833 = vmatprep.mubr.bf16.mxu0 %v941_v4  ;;  %841 = vmatprep.mubr.bf16.mxu1 %v942_v5  ;;  %v944_v11 = vld [vmem:[%s1334_s27 + $0x28] sm:$0xff]   ;;  %v945_v12 = vld [vmem:[%s1334_s27 + $0x10] sm:$0xff]   ;;  %v947_v14 = vld [vmem:[%s1334_s27 + $0x18] sm:$0xff]   ;;  %s1120_s4 = smov [#allocation8]  }
  0x76   : > { %v946_v13 = vld [vmem:[%s1334_s27 + $0x30] sm:$0xff]   ;;  %v948_v15 = vld [vmem:[%s1334_s27 + $0x38] sm:$0xff]   ;;  %v277_v20 = vld [vmem:[%s1345_s7] sm:$0xff]  ;;  %p1039_p2 = pnand %p1038_p7, %p1460_p12  ;;  %s1041_s21 = sshll.u32 %s1120_s4, 4  ;;  %s1042_s21 = int_to_ptr.vmem [resolvable:$false] %s1041_s21 }
  0x77   : > { %820 = vmatpush3.bf16.msra.mxu0 %v934_v1  ;;  %858 = vmatpush3.bf16.msra.mxu1 %v934_v1  ;;  %v279_v16 = vld [vmem:[%s1345_s7 + $0x10] sm:$0xff]  ;;  %v280_v21 = vld [vmem:[%s1345_s7 + $0x18] sm:$0xff]  ;;  %v285_v25 = vld [vmem:[%s1345_s7 + $0x40] sm:$0xff]  ;;  %s1043_s22 = scalar_lea.vmem %s1042_s21, 2048  ;;  %p1044_p0 = scmp.lt.s32.totalorder %s1385_s6, %s1042_s21 }
  0x78   : > { %821 = vmatprep.subr.bf16.mxu0 %v935_v2  ;;  %851 = vmatprep.subr.bf16.mxu1 %v935_v2  ;;  %v287_v17 = vld [vmem:[%s1345_s7 + $0x50] sm:$0xff]  ;;  %v288_v22 = vld [vmem:[%s1345_s7 + $0x58] sm:$0xff]  ;;  %v278_v26 = vld [vmem:[%s1345_s7 + $0x8] sm:$0xff]  ;;  %p1040_p6 = pneg %p1039_p2  ;;  %p1045_p4 = scmp.lt.s32.totalorder %s1043_s22, %s1037_s29 }
  0x79   : > { %v286_v27 = vld [vmem:[%s1345_s7 + $0x48] sm:$0xff]  ;;  %v283_v44 = vld [vmem:[%s1345_s7 + $0x30] sm:$0xff]  ;;  %v281_v48 = vld [vmem:[%s1345_s7 + $0x20] sm:$0xff] }
  0x7a   : > { %v291_v45 = vld [vmem:[%s1345_s7 + $0x70] sm:$0xff]  ;;  %v284_v49 = vld [vmem:[%s1345_s7 + $0x38] sm:$0xff]  ;;  %v289_v53 = vld [vmem:[%s1345_s7 + $0x60] sm:$0xff]  ;;  %p1046_p1 = por %p1045_p4, %p1044_p0 }
  0x7b   : > { %822 = vmatpush3.bf16.msra.mxu0 %v935_v2  ;;  %859 = vmatpush3.bf16.msra.mxu1 %v935_v2  ;;  %v292_v50 = vld [vmem:[%s1345_s7 + $0x78] sm:$0xff]  ;;  %v282_v54 = vld [vmem:[%s1345_s7 + $0x28] sm:$0xff] }
  0x7c   : > { %823 = vmatprep.subr.bf16.mxu0 %v936_v3  ;;  %852 = vmatprep.subr.bf16.mxu1 %v936_v3  ;;  %v290_v55 = vld [vmem:[%s1345_s7 + $0x68] sm:$0xff]  ;;  %p1047_p3 = pnand %p1046_p1, %p1040_p6 }
  0x7f   : > { %824 = vmatpush3.bf16.msra.mxu0 %v936_v3  ;;  %860 = vmatpush3.bf16.msra.mxu1 %v936_v3 }
  0x80   : > { %825 = vmatprep.subr.bf16.mxu0 %v937_v6  ;;  %853 = vmatprep.subr.bf16.mxu1 %v937_v6 }
  0x83   : > { %826 = vmatpush3.bf16.msra.mxu0 %v937_v6  ;;  %861 = vmatpush3.bf16.msra.mxu1 %v937_v6 }
  0x84   : > { %827 = vmatprep.subr.bf16.mxu0 %v938_v7  ;;  %854 = vmatprep.subr.bf16.mxu1 %v938_v7 }
  0x87   : > { %828 = vmatpush3.bf16.msra.mxu0 %v938_v7  ;;  %862 = vmatpush3.bf16.msra.mxu1 %v938_v7 }
  0x88   : > { %829 = vmatprep.subr.bf16.mxu0 %v939_v8  ;;  %855 = vmatprep.subr.bf16.mxu1 %v939_v8 }
  0x8b   : > { %830 = vmatpush3.bf16.msra.mxu0 %v939_v8  ;;  %863 = vmatpush3.bf16.msra.mxu1 %v939_v8 }
  0x8c   : > { %831 = vmatprep.subr.bf16.mxu0 %v940_v9  ;;  %856 = vmatprep.subr.bf16.mxu1 %v940_v9 }
  0x8f   : > { %832 = vmatpush3.bf16.msra.mxu0 %v940_v9  ;;  %864 = vmatpush3.bf16.msra.mxu1 %v940_v9 }
  0x92   : > { %834 = vmatmul.mubr.bf16.vlgmr.msra.gmra.mrb[0].mxu0 %v943_v10  ;;  %842 = vmatmul.mubr.bf16.vlgmr.msra.gmra.mrb[0].mxu1 %v944_v11 }
  0x93   : > { %837 = vmatprep.mubr.bf16.mxu0 %v945_v12  ;;  %845 = vmatprep.mubr.bf16.mxu1 %v946_v13 }
  0x9a   : > { %838 = vmatmul.mubr.bf16.gmra.mrb[4].mxu0 %v947_v14  ;;  %846 = vmatmul.mubr.bf16.gmra.mrb[4].mxu1 %v948_v15 }
 0x165   : > { %v835_v18 = vpop.f32.mrb[0].mxu0  ;;  %v843_v19 = vpop.f32.mrb[0].mxu1 }
 0x166   : > { %v423_v23 = vpop.f32.mrb[1].mxu0  ;;  %v455_v24 = vpop.f32.mrb[1].mxu1  ;;  %v432_v30 = vadd.f32 %v835_v18, %v279_v16  ;;  %v464_v31 = vadd.f32 %v843_v19, %v287_v17 }
 0x167   : > { %v836_v28 = vpop.f32.mrb[2].mxu0  ;;  %v844_v29 = vpop.f32.mrb[2].mxu1  ;;  %v424_v36 = vadd.f32 %v423_v23, %v277_v20  ;;  %v456_v37 = vadd.f32 %v455_v24, %v285_v25 }
 0x168   : > { %v435_v32 = vadd.f32 %v836_v28, %v280_v21  ;;  %v467_v33 = vadd.f32 %v844_v29, %v288_v22  ;;  %v426_v34 = vpop.f32.mrb[3].mxu0  ;;  %v458_v35 = vpop.f32.mrb[3].mxu1 }
 0x169   : > { %v427_v38 = vadd.f32 %v426_v34, %v278_v26  ;;  %v459_v39 = vadd.f32 %v458_v35, %v286_v27 }
 0x16a   : > { %v762_v40 = vpack.c.bf16 %v435_v32, %v432_v30  ;;  %v782_v41 = vpack.c.bf16 %v467_v33, %v464_v31 }
 0x16b   : > { %v757_v42 = vpack.c.bf16 %v427_v38, %v424_v36  ;;  %v777_v43 = vpack.c.bf16 %v459_v39, %v456_v37 }
 0x16c   : > { %794 = vst [vmem:[%s1369_s5 + $0x8] sm:$0xff] %v762_v40   ;;  %798 = vst [vmem:[%s1369_s5 + $0x28] sm:$0xff] %v782_v41  }
 0x16d   : > { %758 = vst [vmem:[%s1369_s5] sm:$0xff] %v757_v42   ;;  %797 = vst [vmem:[%s1369_s5 + $0x20] sm:$0xff] %v777_v43   ;;  %v839_v46 = vpop.f32.mrb[4].mxu0  ;;  %v847_v47 = vpop.f32.mrb[4].mxu1 }
 0x16e   : > { %v439_v51 = vpop.f32.mrb[5].mxu0  ;;  %v471_v52 = vpop.f32.mrb[5].mxu1  ;;  %v448_v58 = vadd.f32 %v839_v46, %v283_v44  ;;  %v480_v59 = vadd.f32 %v847_v47, %v291_v45 }
 0x16f   : > { %v840_v56 = vpop.f32.mrb[6].mxu0  ;;  %v848_v57 = vpop.f32.mrb[6].mxu1  ;;  %v440_v0 = vadd.f32 %v439_v51, %v281_v48  ;;  %v472_v1 = vadd.f32 %v471_v52, %v289_v53 }
 0x170   : > { %v451_v60 = vadd.f32 %v840_v56, %v284_v49  ;;  %v483_v61 = vadd.f32 %v848_v57, %v292_v50  ;;  %v442_v62 = vpop.f32.mrb[7].mxu0  ;;  %v474_v63 = vpop.f32.mrb[7].mxu1 }
 0x171   : > { %v443_v2 = vadd.f32 %v442_v62, %v282_v54  ;;  %v475_v3 = vadd.f32 %v474_v63, %v290_v55 }
 0x172   : > { %v772_v4 = vpack.c.bf16 %v451_v60, %v448_v58  ;;  %v792_v5 = vpack.c.bf16 %v483_v61, %v480_v59 }
 0x173   : > { %v767_v6 = vpack.c.bf16 %v443_v2, %v440_v0  ;;  %v787_v7 = vpack.c.bf16 %v475_v3, %v472_v1 }
 0x174   : > { %796 = vst [vmem:[%s1369_s5 + $0x18] sm:$0xff] %v772_v4   ;;  %800 = vst [vmem:[%s1369_s5 + $0x38] sm:$0xff] %v792_v5  }
 0x175   : > { %795 = vst [vmem:[%s1369_s5 + $0x10] sm:$0xff] %v767_v6   ;;  %799 = vst [vmem:[%s1369_s5 + $0x30] sm:$0xff] %v787_v7  }
 0x176   : > { %1050 = shalt.err (!%p1047_p3)
}
 0x177   : > { %s1051_s24 = scalar_lea.hbm %s1390_s9, 1024  ;;  %s1055_s18 = scalar_lea.hbm %s1441_s3, 2048 }
 0x178   : > { %p1052_p11 = scmp.ne.s32.totalorder %s1390_s9, %s1051_s24  ;;  %p1056_p10 = scmp.lt.u32.totalorder %s1390_s9, %s1441_s3 }
 0x179   : > { %p1057_p13 = scmp.lt.u32.totalorder %s1055_s18, %s1051_s24  ;;  %p1059_p7 = scmp.lt.u32.totalorder %s1051_s24, %s1390_s9 }
 0x17a   : > { %p1053_p9 = pnand %p1052_p11, %p1460_p12 }
 0x17b   : > { %p1058_p5 = por %p1057_p13, %p1056_p10 }
 0x17c   : > { %p1054_p8 = pneg %p1053_p9 }
 0x17d   : > { %p1060_p2 = por %p1059_p7, %p1058_p5 }
 0x17f   : > { %p1061_p6 = pnand %p1060_p2, %p1054_p8 }
 0x181   : > { %1064 = shalt.err (!%p1061_p6)
}
 0x182   : > { %s1121_s7 = smov 64   ;;  %s1122_s5 = smov 4  }
 0x183   : > { %873 = dma.vmem_to_hbm [thread:$0]  (%p1460_p12), %s1385_s6, 1024, %s1390_s9, %s567_s20, %s1121_s7, %s1121_s7, %s1122_s5  }
 0x184 PF: > { %s595_s8 = sand.u32 1, %s1099_s12   ;;  %p1461_p0 = scmp.ne.s32.totalorder %s1451_s28, 0 }
 0x185   : > { %p1462_p4 = scmp.ge.s32.totalorder %s1111_s15, 2  ;;  %s596_s25 = scalar_lea.sflag [#allocation4], %s595_s8 }
 0x187   : > { %p887_p1 = pnand %p1462_p4, %p1461_p0 }
 0x189   : > { %1094 = dma.done.wait (!%p887_p1), %s596_s25, 1024  }
 0x18a   : > { %1096 = vsyncadd (!%p887_p1), %s596_s25, 4294966272  ;;  %p17_p3 = scmp.ge.s32.totalorder %s1164_s16, 4   ;;  %s1463_s12 = smov %s1103_s13 }
 0x18b   : > { %s1464_s13 = smov %s1107_s14  ;;  %s1465_s14 = smov %s1173_s19 }
 0x18c   : > { %s1466_s15 = smov %s1164_s16  ;;  %19 = sbr.rel (!%p17_p3) target bundleno = 6 (0x6), region = 92 }
 0x193   :  { %601 = vsyncpa [#allocation3], 1 }
 0x194   :  { %603 = vsyncpa [#allocation3 + $0x1], 1 }
 0x195   :  { %604 = vsyncpa [#allocation6], 1 }
 0x196   :  { %605 = vsyncpa [#allocation4], 1 }
 0x197   :  { %607 = vsyncpa [#allocation4 + $0x1], 1 }

</bundles_post_ra>
